<compile_context>
chip_gen: v7x
topology: tpu7x:2x2x1
jax: 0.10.0
libtpu: 0.0.40
codegen_flags: <defaults>
</compile_context>

<pallas_src>
import functools

import jax
import jax.numpy as jnp
from jax.experimental import pallas as pl
from jax.experimental.pallas import tpu as pltpu


def _rmsnorm_kernel(x_ref, scale_ref, o_ref, *, eps, inv_dim):
    # x_ref: (tile_rows, dim), scale_ref: (1, dim), o_ref: (tile_rows, dim)
    x = x_ref[...]
    xf = x.astype(jnp.float32)                                   # x.float()
    # sum + fold 1/dim into the rsqrt argument (cheaper than jnp.mean)
    inv = jax.lax.rsqrt(jnp.sum(xf * xf, axis=-1, keepdims=True) * inv_dim + eps)
    if x.dtype == jnp.float32:
        normed = xf * inv                                        # type_as(x) is a no-op
    else:
        normed = (xf * inv).astype(x.dtype)                      # .type_as(x)
    out_dtype = o_ref.dtype
    # Final multiply in the promoted (output) dtype, single store.
    o_ref[...] = normed.astype(out_dtype) * scale_ref[...].astype(out_dtype)


def _round_up(n, m):
    return ((n + m - 1) // m) * m


def _sublane_pack(dtype):
    # 8 sublanes of 32-bit each: 8 rows for f32, 16 for bf16, 32 for int8/fp8.
    itemsize = jnp.dtype(dtype).itemsize
    return max(8, 32 // max(itemsize, 1))


def _tpu_info():
    try:
        return pltpu.get_tpu_info()
    except Exception:
        return None


def _vmem_capacity_bytes(info):
    cap = 64 << 20  # conservative default (v7x per-TC physical VMEM)
    if info is not None:
        try:
            cap = int(getattr(info, "vmem_capacity_bytes", cap)) or cap
        except Exception:
            pass
    return cap


def _num_tensorcores(info):
    # Best-effort detection of TensorCores sharing the grid via megacore.
    for name in ("num_cores", "num_tensorcores", "tensorcore_count", "cores_per_chip"):
        if info is not None and hasattr(info, name):
            try:
                v = int(getattr(info, name))
                if v >= 1:
                    return v
            except Exception:
                pass
    try:
        kind = jax.devices()[0].device_kind.lower()
        if "v7" in kind:
            return 2
    except Exception:
        pass
    return 1


def rmsnorm(x, scale, eps=1e-6, *, row_tile=None, out_dtype=None):
    """x: (..., dim) array; scale: (dim,) parameter (float32 in the module).

    out_dtype defaults to torch promotion (type_as(x) result * scale). Passing
    out_dtype=x.dtype trades exact torch promotion for ~33% less HBM traffic
    on bf16 activations.
    """
    dim = int(x.shape[-1])
    lead_shape = x.shape[:-1]
    rows = 1
    for s in lead_shape:
        rows *= int(s)

    if out_dtype is None:
        out_dtype = jnp.promote_types(x.dtype, scale.dtype)
    out_dtype = jnp.dtype(out_dtype)

    if rows == 0:  # empty leading dims: nothing to normalize
        return jnp.zeros((*lead_shape, dim), dtype=out_dtype)

    x2d = x.reshape(rows, dim)
    scale2d = scale.reshape(1, dim)

    pack = _sublane_pack(x.dtype)
    x_row_bytes = dim * jnp.dtype(x.dtype).itemsize
    out_row_bytes = dim * out_dtype.itemsize
    f32_row_bytes = dim * 4
    scale_bytes = dim * jnp.dtype(scale.dtype).itemsize

    info = _tpu_info()
    vmem_cap = _vmem_capacity_bytes(info)
    num_cores = _num_tensorcores(info)

    if row_tile is None:
        # Double-buffered input + output pipeline buffers plus one f32 compute
        # intermediate per resident tile (the intermediate matters for bf16
        # inputs, where it is 2x the input buffer).
        per_row = 2 * (x_row_bytes + out_row_bytes) + f32_row_bytes
        usable = max((vmem_cap * 85) // 100 - (4 << 20), 4 << 20)  # ~15% headroom
        rt_vmem = usable // per_row
        # Target multi-MiB tiles by bytes (amortizes ~0.35us/step overhead and
        # reaches the measured 85%+ HBM-roofline plateau) rather than a fixed
        # row cap, so small hidden dims still get large tiles.
        rt_bytes = (16 << 20) // max(x_row_bytes, 1)
        rt = max(pack, min(int(rt_vmem), int(rt_bytes)))
        rt = (rt // pack) * pack
        rt = min(rt, _round_up(rows, pack))            # never exceed the problem
        # Multi-TC megacore: keep >= 2 grid steps per core so each core still
        # overlaps DMA with compute. Single-core parts keep the biggest tile.
        if num_cores >= 2:
            min_steps = 2 * num_cores
            if pl.cdiv(rows, rt) < min_steps:
                rt = max(pack, _round_up(pl.cdiv(rows, min_steps), pack))
        row_tile = int(rt)
    else:
        row_tile = max(pack, _round_up(int(row_tile), pack))

    # Ragged last block handled by Pallas (masked writes); no pad / post-slice.
    grid = (pl.cdiv(rows, row_tile),)

    # Raise the scoped VMEM limit past the conservative default, with headroom.
    tile_bytes = row_tile * (2 * (x_row_bytes + out_row_bytes) + f32_row_bytes)
    vmem_limit = min((vmem_cap * 95) // 100,
                     max(tile_bytes + 4 * scale_bytes + (8 << 20), 16 << 20))

    # TODO(synk): for odd hidden sizes (dim % 128 != 0 and dim != full width of
    # a larger fused op) a one-time dim pad would upgrade masked vst.msk stores
    # to lane-dense vst; standard LLM dims don't need it.
    out2d = pl.pallas_call(
        functools.partial(_rmsnorm_kernel, eps=eps, inv_dim=1.0 / dim),
        out_shape=jax.ShapeDtypeStruct((rows, dim), out_dtype),
        grid_spec=pltpu.PrefetchScalarGridSpec(
            num_scalar_prefetch=0,
            grid=grid,
            in_specs=[
                pl.BlockSpec((row_tile, dim), lambda i: (i, 0)),
                pl.BlockSpec((1, dim), lambda i: (0, 0)),
            ],
            out_specs=pl.BlockSpec((row_tile, dim), lambda i: (i, 0)),
        ),
        compiler_params=pltpu.CompilerParams(
            dimension_semantics=("parallel",),
            vmem_limit_bytes=int(vmem_limit),
        ),
    )(x2d, scale2d)

    return out2d.reshape(*lead_shape, dim)


def _reference(x, scale, eps):
    xf = x.astype(jnp.float32)
    normed = xf * jax.lax.rsqrt(jnp.mean(xf * xf, axis=-1, keepdims=True) + eps)
    normed = normed.astype(x.dtype)
    out_dtype = jnp.promote_types(x.dtype, scale.dtype)
    return normed.astype(out_dtype) * scale.astype(out_dtype)


if __name__ == "__main__":
    key = jax.random.PRNGKey(0)
    batch, seq, hidden = 2, 8, 32

    # Deterministic parameter init, matching nn.Parameter(torch.ones(dim)).
    scale = jnp.ones((hidden,), dtype=jnp.float32)

    # float32 activations
    x = jax.random.normal(key, (batch, seq, hidden), dtype=jnp.float32)
    y = rmsnorm(x, scale, eps=1e-6)
    jax.block_until_ready(y)
    ref = _reference(x, scale, 1e-6)
    assert y.dtype == ref.dtype
    assert y.shape == ref.shape
    assert jnp.allclose(y, ref, atol=1e-5, rtol=1e-5), "f32 mismatch vs reference"

    # bf16 activations (exercises the type_as + promotion path)
    xb = x.astype(jnp.bfloat16)
    yb = rmsnorm(xb, scale, eps=1e-6)
    jax.block_until_ready(yb)
    refb = _reference(xb, scale, 1e-6)
    assert yb.dtype == refb.dtype
    assert jnp.allclose(yb, refb, atol=1e-2, rtol=1e-2), "bf16 mismatch vs reference"

    # ragged row count (not a multiple of the tile / sublane pack)
    xr = jax.random.normal(jax.random.PRNGKey(1), (3, 7, hidden), dtype=jnp.float32)
    yr = rmsnorm(xr, scale, eps=1e-6)
    jax.block_until_ready(yr)
    refr = _reference(xr, scale, 1e-6)
    assert jnp.allclose(yr, refr, atol=1e-5, rtol=1e-5), "ragged mismatch vs reference"

    print("KERNEL_OK")
</pallas_src>

<mosaic_0001>
module attributes {stable_mosaic.version = 11 : i64} {
  func.func @_rmsnorm_kernel(%arg0: i32, %arg1: memref<16x32xf32, #tpu.memory_space<vmem>>, %arg2: memref<1x32xf32, #tpu.memory_space<vmem>>, %arg3: memref<16x32xf32, #tpu.memory_space<vmem>>) attributes {dimension_semantics = [#tpu.dimension_semantics<parallel>], iteration_bounds = array<i64: 1>, scalar_prefetch = 0 : i64, scratch_operands = 0 : i64, tpu.core_type = #tpu.core_type<tc>, window_params = [{transform_indices = @transform_0, window_bounds = array<i64: 16, 32>}, {pipeline_mode = #tpu.pipeline_mode<synchronous>, transform_indices = @transform_1, window_bounds = array<i64: 1, 32>}, {transform_indices = @transform_2, window_bounds = array<i64: 16, 32>}]} {
    %c0 = arith.constant 0 : index
    %c0_0 = arith.constant 0 : index
    %0 = vector.load %arg1[%c0, %c0_0] : memref<16x32xf32, #tpu.memory_space<vmem>>, vector<16x32xf32>
    %1 = arith.mulf %0, %0 : vector<16x32xf32>
    %cst = arith.constant dense<0.000000e+00> : vector<16xf32>
    %2 = vector.multi_reduction <add>, %1, %cst [1] : vector<16x32xf32> to vector<16xf32>
    %3 = vector.shape_cast %2 : vector<16xf32> to vector<16x1xf32>
    %cst_1 = arith.constant 3.125000e-02 : f32
    %4 = vector.broadcast %cst_1 : f32 to vector<16x1xf32>
    %5 = arith.mulf %3, %4 : vector<16x1xf32>
    %cst_2 = arith.constant 9.99999997E-7 : f32
    %6 = vector.broadcast %cst_2 : f32 to vector<16x1xf32>
    %7 = arith.addf %5, %6 : vector<16x1xf32>
    %8 = math.rsqrt %7 : vector<16x1xf32>
    %9 = vector.broadcast %8 : vector<16x1xf32> to vector<16x32xf32>
    %10 = arith.mulf %0, %9 : vector<16x32xf32>
    %c0_3 = arith.constant 0 : index
    %c0_4 = arith.constant 0 : index
    %11 = vector.load %arg2[%c0_3, %c0_4] : memref<1x32xf32, #tpu.memory_space<vmem>>, vector<1x32xf32>
    %12 = vector.broadcast %11 : vector<1x32xf32> to vector<16x32xf32>
    %13 = arith.mulf %10, %12 : vector<16x32xf32>
    %c0_5 = arith.constant 0 : index
    %c0_6 = arith.constant 0 : index
    %14 = vector.load %arg3[%c0_5, %c0_6] : memref<16x32xf32, #tpu.memory_space<vmem>>, vector<16x32xf32>
    tpu.vector_store %arg3[%c0_5, %c0_6], %13 {strides = array<i32>} : memref<16x32xf32, #tpu.memory_space<vmem>>, vector<16x32xf32>,
    return
  }
  func.func @transform_0(%arg0: i32) -> (i32, i32) {
    %c0_i32 = arith.constant 0 : i32
    %c0_i32_0 = arith.constant 0 : i32
    return %arg0, %c0_i32 : i32, i32
  }
  func.func @transform_1(%arg0: i32) -> (i32, i32) {
    %c0_i32 = arith.constant 0 : i32
    %c0_i32_0 = arith.constant 0 : i32
    %c0_i32_1 = arith.constant 0 : i32
    return %c0_i32, %c0_i32_0 : i32, i32
  }
  func.func @transform_2(%arg0: i32) -> (i32, i32) {
    %c0_i32 = arith.constant 0 : i32
    %c0_i32_0 = arith.constant 0 : i32
    return %arg0, %c0_i32 : i32, i32
  }
}

</mosaic_0001>

<bundles_post_ra>
// kernel: tpu_custom_call.1
= control target key start
LH: loop header
LB: loop body
LE: loop exit
PB: predicated region body
PF: predicated region fallthrough
CT: control target
= control target key end

     0   :  { %7 = vsyncpa [#allocation3], 0  ;;  %s186_s0 = inlined_call_operand.hbm [shape: f32[16,32], index: 0, kind: input, shape index: {}]   ;;  %s187_s1 = inlined_call_operand.vmem [shape: f32[1,32], index: 1, kind: input, shape index: {}]   ;;  %s188_s2 = inlined_call_operand.hbm [shape: f32[16,32], index: 2, kind: output, shape index: {}]  }
   0x1   :  { %8 = vsyncpa [#allocation4], 0  ;;  %s130_s9 = smov [#allocation2]   ;;  %s82_s13 = scalar_lea.hbm %s186_s0, 256 }
   0x2   :  { %s14_s10 = sshll.u32 %s130_s9, 4  ;;  %p83_p0 = scmp.ne.s32.totalorder %s186_s0, %s82_s13  ;;  %s15_s10 = int_to_ptr.vmem [resolvable:$true] %s14_s10 }
   0x3   :  { %p86_p1 = scmp.lt.u32.totalorder %s82_s13, %s186_s0 }
   0x5   :  { %p88_p2 = pnand %p86_p1, %p83_p0 }
   0x7   :  { %91 = shalt.err (!%p88_p2)
}
   0x8   :  { %s92_s18 = scalar_lea.vmem %s15_s10, 256  ;;  %p97_p4 = scmp.lt.s32.totalorder %s15_s10, %s15_s10 }
   0x9   :  { %p93_p3 = scmp.ne.s32.totalorder %s15_s10, %s92_s18  ;;  %p98_p5 = scmp.lt.s32.totalorder %s92_s18, %s92_s18 }
   0xb   :  { %p99_p6 = por %p98_p5, %p97_p4 }
   0xd   :  { %p100_p7 = pnand %p99_p6, %p93_p3 }
   0xf   :  { %103 = shalt.err (!%p100_p7)
}
  0x10   :  { %s131_s19 = smov 128   ;;  %s132_s20 = smov 8  }
  0x11   :  { %20 = dma.hbm_to_vmem [thread:$0]  %s186_s0, 256, %s15_s10, [#allocation3], %s131_s19, %s131_s19, %s132_s20  }
  0x12   :  { %126 = dma.done.wait [#allocation3], 256  }
  0x13   :  { %127 = vsyncadd [#allocation3], 4294967040  ;;  %v26_v0 = vld [vmem:[#allocation2] sm:$0xff]  ;;  %vm30_vm0 = vcmask 261120   ;;  %v27_v1 = vld [vmem:[#allocation2 + $0x8] sm:$0xff]  ;;  %s133_s24 = smov [#allocation5]  }
  0x14   :  { %v28_v2 = vmul.f32 %v26_v0, %v26_v0  ;;  %v29_v3 = vmul.f32 %v27_v1, %v27_v1  ;;  %v73_v13 = vld [vmem:[%s187_s1] ss:$0 sm:$0xff]  ;;  %s61_s25 = sshll.u32 %s133_s24, 4  ;;  %s62_s25 = int_to_ptr.vmem [resolvable:$true] %s61_s25 }
  0x15   :  { %s104_s26 = scalar_lea.vmem %s62_s25, 256  ;;  %p109_p9 = scmp.lt.s32.totalorder %s62_s25, %s62_s25 }
  0x16   :  { %v31_v4 = vsel %vm30_vm0, %v28_v2, 0.0  ;;  %v34_v5 = vsel %vm30_vm0, %v29_v3, 0.0  ;;  %p105_p8 = scmp.ne.s32.totalorder %s62_s25, %s104_s26  ;;  %p110_p10 = scmp.lt.s32.totalorder %s104_s26, %s104_s26 }
  0x17   :  { %32 = vadd.xlane.f32.xlu0 %v31_v4 }
  0x18   :  { %p111_p11 = por %p110_p10, %p109_p9 }
  0x1a   :  { %p112_p12 = pnand %p111_p11, %p105_p8 }
  0x1b   :  { %35 = vadd.xlane.f32.xlu0 %v34_v5 }
  0xa4   :  { %v33_v6 = vpop.xlane.xlu0 %32 }
  0xa5   :  { %v37_v7 = vmul.f32 0.03125, %v33_v6 }
  0xa7   :  { %v39_v8 = vadd.f32 1e-06, %v37_v7 }
  0xa8   :  { %v36_v9 = vpop.xlane.xlu0 %35 }
  0xa9   :  { %78 = vrsqrt.f32 %v39_v8  ;;  %v38_v10 = vmul.f32 0.03125, %v36_v9 }
  0xab   :  { %v40_v11 = vadd.f32 1e-06, %v38_v10 }
  0xad   :  { %80 = vrsqrt.f32 %v40_v11 }
  0xb3   :  { %v79_v12 = vpop.eup %78 }
  0xb4   :  { %v43_v14 = vmul.f32 %v79_v12, %v26_v0 }
  0xb6   :  { %v52_v15 = vmul.f32 %v73_v13, %v43_v14 }
  0xb7   :  { %v81_v16 = vpop.eup %80 }
  0xb8   :  { %v44_v17 = vmul.f32 %v81_v16, %v27_v1  ;;  %54 = vst.msk [vmem:[#allocation5] sm:$0xff] %vm30_vm0, %v52_v15 }
  0xba   :  { %v53_v18 = vmul.f32 %v73_v13, %v44_v17 }
  0xbc   :  { %55 = vst.msk [vmem:[#allocation5 + $0x8] sm:$0xff] %vm30_vm0, %v53_v18 }
  0xbd   :  { %115 = shalt.err (!%p112_p12)
}
  0xbe   :  { %s116_s28 = scalar_lea.hbm %s188_s2, 256 }
  0xbf   :  { %p117_p13 = scmp.ne.s32.totalorder %s188_s2, %s116_s28  ;;  %p120_p0 = scmp.lt.u32.totalorder %s116_s28, %s188_s2 }
  0xc1   :  { %p122_p1 = pnand %p120_p0, %p117_p13 }
  0xc3   :  { %125 = shalt.err (!%p122_p1)
}
  0xc4   :  { %67 = dma.vmem_to_hbm [thread:$0]  %s62_s25, 256, %s188_s2, [#allocation4], %s131_s19, %s131_s19, %s132_s20  }
  0xc5   :  { %128 = dma.done.wait [#allocation4], 256  }
  0xc6   :  { %129 = vsyncadd [#allocation4], 4294967040 }
  0xc7   :  { %71 = vsyncpa [#allocation3], 1 }
  0xc8   :  { %72 = vsyncpa [#allocation4], 1 }

</bundles_post_ra>
